<compile_context>
chip_gen: v6e
topology: v6e:2x2x1
jax: 0.10.0
libtpu: 0.0.40
codegen_flags: <defaults>
</compile_context>

<pallas_src>
import math
import functools

import jax
import jax.numpy as jnp
from jax.experimental import pallas as pl
from jax.experimental.pallas import tpu as pltpu


# ----------------------------------------------------------------------------- kernel


def _self_attn_kernel(*refs, nhead, has_pos):
    """One batch tile (Bt, L, D) per grid step: fused QK projection + V projection,
    per-head attention (exact softmax), out projection, residual, LayerNorm."""
    if has_pos:
        (x_ref, pos_ref, wqk_ref, bqk_ref, wv_ref, bv_ref,
         wo_ref, bo_ref, g_ref, beta_ref, o_ref) = refs
    else:
        (x_ref, wqk_ref, bqk_ref, wv_ref, bv_ref,
         wo_ref, bo_ref, g_ref, beta_ref, o_ref) = refs
        pos_ref = None

    x = x_ref[...]                                   # (Bt, L, D) float32
    Bt, L, D = x.shape
    H = nhead
    hd = D // H
    md = wqk_ref.dtype                               # MXU input dtype (bf16 or f32)

    x2 = x.reshape(Bt * L, D)                        # leading-dim merge: free
    if pos_ref is None:
        qk_in = x2                                   # q = k = queries
    else:
        qk_in = (x + pos_ref[...]).reshape(Bt * L, D)

    # Fused Q/K projection (1/sqrt(hd) already folded into the Q half host-side)
    # plus V projection.  Accumulate in f32.
    qk = jnp.dot(qk_in.astype(md), wqk_ref[...],
                 preferred_element_type=jnp.float32) + bqk_ref[...]   # (Bt*L, 2D)
    v = jnp.dot(x2.astype(md), wv_ref[...],
                preferred_element_type=jnp.float32) + bv_ref[...]     # (Bt*L, D)

    # Per-head attention, batched over the Bt batch tile.  Head contexts stay in
    # vregs and are concatenated once; no VMEM scratch, no masked stores.
    ctx_heads = []
    for h in range(H):                               # static unroll over heads
        sl = slice(h * hd, (h + 1) * hd)
        qh = qk[:, sl].reshape(Bt, L, hd).astype(md)
        kh = qk[:, D + h * hd: D + (h + 1) * hd].reshape(Bt, L, hd).astype(md)
        vh = v[:, sl].reshape(Bt, L, hd).astype(md)

        s = jnp.einsum('bqd,bkd->bqk', qh, kh,
                       preferred_element_type=jnp.float32)            # (Bt, L, L)
        s = s - jnp.max(s, axis=-1, keepdims=True)
        p = jnp.exp(s)
        p = p / jnp.sum(p, axis=-1, keepdims=True)   # exact softmax normalization

        ctx_heads.append(jnp.einsum('bqk,bkd->bqd', p.astype(md), vh,
                                    preferred_element_type=jnp.float32))

    ctx = jnp.concatenate(ctx_heads, axis=-1).reshape(Bt * L, D)      # (Bt*L, D)

    attn = jnp.dot(ctx.astype(md), wo_ref[...],
                   preferred_element_type=jnp.float32) + bo_ref[...]  # (Bt*L, D)

    # Residual + LayerNorm (dropout p=0.0 -> identity); vector math stays f32.
    y = x2 + attn
    mean = jnp.mean(y, axis=-1, keepdims=True)
    var = jnp.mean((y - mean) ** 2, axis=-1, keepdims=True)
    y = (y - mean) * jax.lax.rsqrt(var + 1e-5)
    y = y * g_ref[...] + beta_ref[...]
    o_ref[...] = y.reshape(Bt, L, D).astype(o_ref.dtype)


# -------------------------------------------------------------------- host-side prep


def prepare_params(params, *, nhead, matmul_dtype=jnp.bfloat16):
    """One-time weight prep (slice, transpose, scale-fold, dtype cast).  Cache the
    returned dict and reuse it across calls: the per-call path then does no weight
    manipulation at all.  bf16 is the recommended MXU dtype on v5e/v6e/v7x."""
    w_in = jnp.asarray(params["in_proj_weight"])          # (3D, D)
    b_in = jnp.asarray(params["in_proj_bias"])            # (3D,)
    D3, D = w_in.shape
    assert D3 == 3 * D
    assert D % nhead == 0, "d_model must be divisible by nhead"
    scale = 1.0 / math.sqrt(D // nhead)

    # Fold the softmax scale into the Q projection (weight-side, one-time).
    w_q = w_in[:D] * scale
    b_q = b_in[:D] * scale
    w_k, b_k = w_in[D:2 * D], b_in[D:2 * D]
    w_v, b_v = w_in[2 * D:], b_in[2 * D:]

    return {
        "wqk": jnp.concatenate([w_q, w_k], axis=0).T.astype(matmul_dtype),   # (D, 2D)
        "bqk": jnp.concatenate([b_q, b_k]).reshape(1, 2 * D).astype(jnp.float32),
        "wv": w_v.T.astype(matmul_dtype),                                    # (D, D)
        "bv": b_v.reshape(1, D).astype(jnp.float32),
        "wo": jnp.asarray(params["out_proj_weight"]).T.astype(matmul_dtype), # (D, D)
        "bo": jnp.asarray(params["out_proj_bias"]).reshape(1, D).astype(jnp.float32),
        "gamma": jnp.asarray(params["ln_weight"]).reshape(1, D).astype(jnp.float32),
        "beta": jnp.asarray(params["ln_bias"]).reshape(1, D).astype(jnp.float32),
    }


def _estimate_vmem_bytes(bb, L, D, H, mm_bytes, has_pos):
    """Rough per-grid-step VMEM footprint: double-buffered activation blocks,
    double-buffered resident weights, and live f32 intermediates."""
    f32 = 4
    n_streams = 3 if has_pos else 2                       # x, (pos), out
    io = 2 * n_streams * bb * L * D * f32                 # double-buffered blocks
    w = 2 * (2 * D * D + D * D + D * D) * mm_bytes        # wqk + wv + wo (x2 buffers)
    w += 2 * (2 * D + 4 * D) * f32                        # biases / LN params
    inter = bb * L * 3 * D * f32                          # qk (2D) + v (D)
    inter += 2 * bb * L * L * f32                         # one head's scores + probs
    inter += 2 * bb * L * D * f32                         # ctx heads + attn/y
    return io + w + inter


def _pick_block_b(B, L, D, H, mm_bytes, has_pos, budget):
    fitting = [d for d in range(1, B + 1)
               if B % d == 0
               and _estimate_vmem_bytes(d, L, D, H, mm_bytes, has_pos) <= budget]
    if not fitting:
        fitting = [1]
    # Prefer >= 2 grid steps on the "parallel" batch axis: gives the pipeline
    # something to overlap and lets v7x shard the two TensorCores.
    multi_step = [d for d in fitting if B // d >= 2]
    return max(multi_step) if multi_step else max(fitting)


# ------------------------------------------------------------------------- entry point


def self_attention_layer(queries, prepared, *, nhead, query_pos=None, block_b=None):
    """queries: (B, L, D) float32; prepared: output of prepare_params()."""
    B, L, D = queries.shape
    assert D % nhead == 0, "d_model must be divisible by nhead"
    has_pos = query_pos is not None
    mm_bytes = jnp.dtype(prepared["wqk"].dtype).itemsize

    # Generation-aware VMEM budget (v7x has 64 MiB physical vs 128 MiB on v5e/v6e).
    try:
        vmem_cap = int(pltpu.get_tpu_info().vmem_capacity_bytes)
    except Exception:  # conservative fallback (v7x-sized)
        vmem_cap = 64 << 20
    budget = min(int(0.4 * vmem_cap), 48 << 20)

    if block_b is None:
        block_b = _pick_block_b(B, L, D, nhead, mm_bytes, has_pos, budget)
    assert B % block_b == 0
    est = _estimate_vmem_bytes(block_b, L, D, nhead, mm_bytes, has_pos)
    vmem_limit = int(min(0.9 * vmem_cap, max(2 * est, 32 << 20)))

    kernel = functools.partial(_self_attn_kernel, nhead=nhead, has_pos=has_pos)

    def act_spec():
        return pl.BlockSpec((block_b, L, D), lambda b: (b, 0, 0))

    def full(shape):
        return pl.BlockSpec(shape, lambda b, _n=len(shape): (0,) * _n)

    in_specs = [act_spec()]
    args = [queries]
    if has_pos:
        in_specs.append(act_spec())
        args.append(query_pos)
    weight_keys = ("wqk", "bqk", "wv", "bv", "wo", "bo", "gamma", "beta")
    in_specs += [full(prepared[k].shape) for k in weight_keys]
    args += [prepared[k] for k in weight_keys]

    return pl.pallas_call(
        kernel,
        out_shape=jax.ShapeDtypeStruct((B, L, D), queries.dtype),
        grid_spec=pltpu.PrefetchScalarGridSpec(
            num_scalar_prefetch=0,
            grid=(B // block_b,),
            in_specs=in_specs,
            out_specs=act_spec(),
        ),
        compiler_params=pltpu.CompilerParams(
            dimension_semantics=("parallel",),
            vmem_limit_bytes=vmem_limit),
    )(*args)


# --------------------------------------------------------------------------- reference


def _reference(queries, params, *, nhead, query_pos=None):
    """Pure-JAX reference mirroring PyTorch F.multi_head_attention_forward
    (full f32 matmul precision so the f32 kernel can be checked tightly)."""
    hp = jax.lax.Precision.HIGHEST
    B, L, D = queries.shape
    hd = D // nhead
    qk_in = queries if query_pos is None else queries + query_pos
    w_in, b_in = params["in_proj_weight"], params["in_proj_bias"]
    q = jnp.dot(qk_in, w_in[:D].T, precision=hp) + b_in[:D]
    k = jnp.dot(qk_in, w_in[D:2 * D].T, precision=hp) + b_in[D:2 * D]
    v = jnp.dot(queries, w_in[2 * D:].T, precision=hp) + b_in[2 * D:]
    q = q.reshape(B, L, nhead, hd).transpose(0, 2, 1, 3)
    k = k.reshape(B, L, nhead, hd).transpose(0, 2, 1, 3)
    v = v.reshape(B, L, nhead, hd).transpose(0, 2, 1, 3)
    s = jnp.einsum("bhqd,bhkd->bhqk", q, k, precision=hp) / math.sqrt(hd)
    p = jax.nn.softmax(s, axis=-1)
    ctx = jnp.einsum("bhqk,bhkd->bhqd", p, v, precision=hp)
    ctx = ctx.transpose(0, 2, 1, 3).reshape(B, L, D)
    attn = jnp.dot(ctx, params["out_proj_weight"].T, precision=hp) + params["out_proj_bias"]
    y = queries + attn
    mean = y.mean(-1, keepdims=True)
    var = ((y - mean) ** 2).mean(-1, keepdims=True)
    y = (y - mean) / jnp.sqrt(var + 1e-5)
    return y * params["ln_weight"] + params["ln_bias"]


def _xavier_uniform(key, shape):
    fan_out, fan_in = shape
    a = math.sqrt(6.0 / (fan_in + fan_out))
    return jax.random.uniform(key, shape, jnp.float32, -a, a)


if __name__ == "__main__":
    d_model, nhead = 32, 4
    B, L = 2, 8

    key = jax.random.PRNGKey(0)
    k_q, k_pos, k_w1, k_w2 = jax.random.split(key, 4)

    # Deterministic parameter init (shapes per nn.MultiheadAttention / LayerNorm;
    # biases/LN params keep their PyTorch defaults after _reset_parameters()).
    params = {
        "in_proj_weight": _xavier_uniform(k_w1, (3 * d_model, d_model)),
        "in_proj_bias": jnp.zeros((3 * d_model,), jnp.float32),
        "out_proj_weight": _xavier_uniform(k_w2, (d_model, d_model)),
        "out_proj_bias": jnp.zeros((d_model,), jnp.float32),
        "ln_weight": jnp.ones((d_model,), jnp.float32),
        "ln_bias": jnp.zeros((d_model,), jnp.float32),
    }

    queries = jax.random.normal(k_q, (B, L, d_model), jnp.float32)
    query_pos = jax.random.normal(k_pos, (B, L, d_model), jnp.float32)

    ref = _reference(queries, params, nhead=nhead, query_pos=query_pos)
    ref_nopos = _reference(queries, params, nhead=nhead, query_pos=None)

    # f32 MXU path: exact softmax -> tight tolerance.
    prep_f32 = prepare_params(params, nhead=nhead, matmul_dtype=jnp.float32)
    out_f32 = jax.block_until_ready(
        self_attention_layer(queries, prep_f32, nhead=nhead, query_pos=query_pos))
    assert out_f32.shape == (B, L, d_model)
    assert jnp.allclose(out_f32, ref, atol=1e-4, rtol=1e-4), "f32 kernel mismatch vs reference"

    # bf16 MXU path (default; recommended on v5e/v6e/v7x).  Softmax/LayerNorm stay f32.
    prep_bf16 = prepare_params(params, nhead=nhead)     # matmul_dtype=bfloat16 default
    out_bf16 = jax.block_until_ready(
        self_attention_layer(queries, prep_bf16, nhead=nhead, query_pos=query_pos))
    assert jnp.allclose(out_bf16, ref, atol=5e-2, rtol=5e-2), "bf16 kernel mismatch vs reference"

    # query_pos=None variant: the pos HBM stream is not DMA'd at all.
    out_nopos = jax.block_until_ready(
        self_attention_layer(queries, prep_f32, nhead=nhead, query_pos=None))
    assert jnp.allclose(out_nopos, ref_nopos, atol=1e-4, rtol=1e-4), "no-pos kernel mismatch"

    print("KERNEL_OK")
</pallas_src>

<mosaic_0001>
module attributes {stable_mosaic.version = 11 : i64} {
  func.func @_self_attn_kernel(%arg0: i32, %arg1: memref<1x8x32xf32, #tpu.memory_space<vmem>>, %arg2: memref<1x8x32xf32, #tpu.memory_space<vmem>>, %arg3: memref<32x64xf32, #tpu.memory_space<vmem>>, %arg4: memref<1x64xf32, #tpu.memory_space<vmem>>, %arg5: memref<32x32xf32, #tpu.memory_space<vmem>>, %arg6: memref<1x32xf32, #tpu.memory_space<vmem>>, %arg7: memref<32x32xf32, #tpu.memory_space<vmem>>, %arg8: memref<1x32xf32, #tpu.memory_space<vmem>>, %arg9: memref<1x32xf32, #tpu.memory_space<vmem>>, %arg10: memref<1x32xf32, #tpu.memory_space<vmem>>, %arg11: memref<1x8x32xf32, #tpu.memory_space<vmem>>) attributes {dimension_semantics = [#tpu.dimension_semantics<parallel>], iteration_bounds = array<i64: 2>, scalar_prefetch = 0 : i64, scratch_operands = 0 : i64, tpu.core_type = #tpu.core_type<tc>, window_params = [{transform_indices = @transform_0, window_bounds = array<i64: 1, 8, 32>}, {transform_indices = @transform_1, window_bounds = array<i64: 1, 8, 32>}, {pipeline_mode = #tpu.pipeline_mode<synchronous>, transform_indices = @transform_2, window_bounds = array<i64: 32, 64>}, {pipeline_mode = #tpu.pipeline_mode<synchronous>, transform_indices = @transform_3, window_bounds = array<i64: 1, 64>}, {pipeline_mode = #tpu.pipeline_mode<synchronous>, transform_indices = @transform_4, window_bounds = array<i64: 32, 32>}, {pipeline_mode = #tpu.pipeline_mode<synchronous>, transform_indices = @transform_5, window_bounds = array<i64: 1, 32>}, {pipeline_mode = #tpu.pipeline_mode<synchronous>, transform_indices = @transform_6, window_bounds = array<i64: 32, 32>}, {pipeline_mode = #tpu.pipeline_mode<synchronous>, transform_indices = @transform_7, window_bounds = array<i64: 1, 32>}, {pipeline_mode = #tpu.pipeline_mode<synchronous>, transform_indices = @transform_8, window_bounds = array<i64: 1, 32>}, {pipeline_mode = #tpu.pipeline_mode<synchronous>, transform_indices = @transform_9, window_bounds = array<i64: 1, 32>}, {transform_indices = @transform_10, window_bounds = array<i64: 1, 8, 32>}]} {
    %c0 = arith.constant 0 : index
    %c0_0 = arith.constant 0 : index
    %c0_1 = arith.constant 0 : index
    %0 = vector.load %arg1[%c0, %c0_0, %c0_1] : memref<1x8x32xf32, #tpu.memory_space<vmem>>, vector<1x8x32xf32>
    %1 = vector.shape_cast %0 : vector<1x8x32xf32> to vector<8x32xf32>
    %c0_2 = arith.constant 0 : index
    %c0_3 = arith.constant 0 : index
    %c0_4 = arith.constant 0 : index
    %2 = vector.load %arg2[%c0_2, %c0_3, %c0_4] : memref<1x8x32xf32, #tpu.memory_space<vmem>>, vector<1x8x32xf32>
    %3 = arith.addf %0, %2 : vector<1x8x32xf32>
    %4 = vector.shape_cast %3 : vector<1x8x32xf32> to vector<8x32xf32>
    %c0_5 = arith.constant 0 : index
    %c0_6 = arith.constant 0 : index
    %5 = vector.load %arg3[%c0_5, %c0_6] : memref<32x64xf32, #tpu.memory_space<vmem>>, vector<32x64xf32>
    %cst = arith.constant dense<0.000000e+00> : vector<8x64xf32>
    %6 = tpu.matmul %4, %5, %cst {dimension_numbers = #tpu.dot_dimension_numbers<[1], [0], [0], [1], [0, 0, 1, 1], [], []>} : vector<8x32xf32>, vector<32x64xf32>, vector<8x64xf32> -> vector<8x64xf32>
    %c0_7 = arith.constant 0 : index
    %c0_8 = arith.constant 0 : index
    %7 = vector.load %arg4[%c0_7, %c0_8] : memref<1x64xf32, #tpu.memory_space<vmem>>, vector<1x64xf32>
    %8 = vector.broadcast %7 : vector<1x64xf32> to vector<8x64xf32>
    %9 = arith.addf %6, %8 : vector<8x64xf32>
    %c0_9 = arith.constant 0 : index
    %c0_10 = arith.constant 0 : index
    %10 = vector.load %arg5[%c0_9, %c0_10] : memref<32x32xf32, #tpu.memory_space<vmem>>, vector<32x32xf32>
    %cst_11 = arith.constant dense<0.000000e+00> : vector<8x32xf32>
    %11 = tpu.matmul %1, %10, %cst_11 {dimension_numbers = #tpu.dot_dimension_numbers<[1], [0], [0], [1], [0, 0, 1, 1], [], []>} : vector<8x32xf32>, vector<32x32xf32>, vector<8x32xf32> -> vector<8x32xf32>
    %c0_12 = arith.constant 0 : index
    %c0_13 = arith.constant 0 : index
    %12 = vector.load %arg6[%c0_12, %c0_13] : memref<1x32xf32, #tpu.memory_space<vmem>>, vector<1x32xf32>
    %13 = vector.broadcast %12 : vector<1x32xf32> to vector<8x32xf32>
    %14 = arith.addf %11, %13 : vector<8x32xf32>
    %15 = vector.extract_strided_slice %9 {offsets = [0, 0], sizes = [8, 8], strides = [1, 1]} : vector<8x64xf32> to vector<8x8xf32>
    %16 = vector.shape_cast %15 : vector<8x8xf32> to vector<1x8x8xf32>
    %17 = vector.extract_strided_slice %9 {offsets = [0, 32], sizes = [8, 8], strides = [1, 1]} : vector<8x64xf32> to vector<8x8xf32>
    %18 = vector.shape_cast %17 : vector<8x8xf32> to vector<1x8x8xf32>
    %19 = vector.extract_strided_slice %14 {offsets = [0, 0], sizes = [8, 8], strides = [1, 1]} : vector<8x32xf32> to vector<8x8xf32>
    %20 = vector.shape_cast %19 : vector<8x8xf32> to vector<1x8x8xf32>
    "tpu.trace_start"() <{level = 10 : i32, message = "bqd,bkd->bqk"}> : () -> ()
    %cst_14 = arith.constant dense<0.000000e+00> : vector<1x8x8xf32>
    %21 = tpu.matmul %16, %18, %cst_14 {dimension_numbers = #tpu.dot_dimension_numbers<[2], [2], [1], [1], [0, 0, 0, 1, 1, 1], [0], [0]>} : vector<1x8x8xf32>, vector<1x8x8xf32>, vector<1x8x8xf32> -> vector<1x8x8xf32>
    "tpu.trace_stop"() : () -> ()
    %cst_15 = arith.constant dense<0xFF800000> : vector<1x8xf32>
    %22 = vector.multi_reduction <maximumf>, %21, %cst_15 [2] : vector<1x8x8xf32> to vector<1x8xf32>
    %23 = vector.shape_cast %22 : vector<1x8xf32> to vector<1x8x1xf32>
    %24 = vector.broadcast %23 : vector<1x8x1xf32> to vector<1x8x8xf32>
    %25 = arith.subf %21, %24 : vector<1x8x8xf32>
    %26 = math.exp %25 : vector<1x8x8xf32>
    %cst_16 = arith.constant dense<0.000000e+00> : vector<1x8xf32>
    %27 = vector.multi_reduction <add>, %26, %cst_16 [2] : vector<1x8x8xf32> to vector<1x8xf32>
    %28 = vector.shape_cast %27 : vector<1x8xf32> to vector<1x8x1xf32>
    %29 = vector.broadcast %28 : vector<1x8x1xf32> to vector<1x8x8xf32>
    %30 = arith.divf %26, %29 : vector<1x8x8xf32>
    "tpu.trace_start"() <{level = 10 : i32, message = "bqk,bkd->bqd"}> : () -> ()
    %cst_17 = arith.constant dense<0.000000e+00> : vector<1x8x8xf32>
    %31 = tpu.matmul %30, %20, %cst_17 {dimension_numbers = #tpu.dot_dimension_numbers<[2], [1], [1], [2], [0, 0, 0, 1, 1, 2], [0], [0]>} : vector<1x8x8xf32>, vector<1x8x8xf32>, vector<1x8x8xf32> -> vector<1x8x8xf32>
    "tpu.trace_stop"() : () -> ()
    %32 = vector.extract_strided_slice %9 {offsets = [0, 8], sizes = [8, 8], strides = [1, 1]} : vector<8x64xf32> to vector<8x8xf32>
    %33 = vector.shape_cast %32 : vector<8x8xf32> to vector<1x8x8xf32>
    %34 = vector.extract_strided_slice %9 {offsets = [0, 40], sizes = [8, 8], strides = [1, 1]} : vector<8x64xf32> to vector<8x8xf32>
    %35 = vector.shape_cast %34 : vector<8x8xf32> to vector<1x8x8xf32>
    %36 = vector.extract_strided_slice %14 {offsets = [0, 8], sizes = [8, 8], strides = [1, 1]} : vector<8x32xf32> to vector<8x8xf32>
    %37 = vector.shape_cast %36 : vector<8x8xf32> to vector<1x8x8xf32>
    "tpu.trace_start"() <{level = 10 : i32, message = "bqd,bkd->bqk"}> : () -> ()
    %cst_18 = arith.constant dense<0.000000e+00> : vector<1x8x8xf32>
    %38 = tpu.matmul %33, %35, %cst_18 {dimension_numbers = #tpu.dot_dimension_numbers<[2], [2], [1], [1], [0, 0, 0, 1, 1, 1], [0], [0]>} : vector<1x8x8xf32>, vector<1x8x8xf32>, vector<1x8x8xf32> -> vector<1x8x8xf32>
    "tpu.trace_stop"() : () -> ()
    %cst_19 = arith.constant dense<0xFF800000> : vector<1x8xf32>
    %39 = vector.multi_reduction <maximumf>, %38, %cst_19 [2] : vector<1x8x8xf32> to vector<1x8xf32>
    %40 = vector.shape_cast %39 : vector<1x8xf32> to vector<1x8x1xf32>
    %41 = vector.broadcast %40 : vector<1x8x1xf32> to vector<1x8x8xf32>
    %42 = arith.subf %38, %41 : vector<1x8x8xf32>
    %43 = math.exp %42 : vector<1x8x8xf32>
    %cst_20 = arith.constant dense<0.000000e+00> : vector<1x8xf32>
    %44 = vector.multi_reduction <add>, %43, %cst_20 [2] : vector<1x8x8xf32> to vector<1x8xf32>
    %45 = vector.shape_cast %44 : vector<1x8xf32> to vector<1x8x1xf32>
    %46 = vector.broadcast %45 : vector<1x8x1xf32> to vector<1x8x8xf32>
    %47 = arith.divf %43, %46 : vector<1x8x8xf32>
    "tpu.trace_start"() <{level = 10 : i32, message = "bqk,bkd->bqd"}> : () -> ()
    %cst_21 = arith.constant dense<0.000000e+00> : vector<1x8x8xf32>
    %48 = tpu.matmul %47, %37, %cst_21 {dimension_numbers = #tpu.dot_dimension_numbers<[2], [1], [1], [2], [0, 0, 0, 1, 1, 2], [0], [0]>} : vector<1x8x8xf32>, vector<1x8x8xf32>, vector<1x8x8xf32> -> vector<1x8x8xf32>
    "tpu.trace_stop"() : () -> ()
    %49 = vector.extract_strided_slice %9 {offsets = [0, 16], sizes = [8, 8], strides = [1, 1]} : vector<8x64xf32> to vector<8x8xf32>
    %50 = vector.shape_cast %49 : vector<8x8xf32> to vector<1x8x8xf32>
    %51 = vector.extract_strided_slice %9 {offsets = [0, 48], sizes = [8, 8], strides = [1, 1]} : vector<8x64xf32> to vector<8x8xf32>
    %52 = vector.shape_cast %51 : vector<8x8xf32> to vector<1x8x8xf32>
    %53 = vector.extract_strided_slice %14 {offsets = [0, 16], sizes = [8, 8], strides = [1, 1]} : vector<8x32xf32> to vector<8x8xf32>
    %54 = vector.shape_cast %53 : vector<8x8xf32> to vector<1x8x8xf32>
    "tpu.trace_start"() <{level = 10 : i32, message = "bqd,bkd->bqk"}> : () -> ()
    %cst_22 = arith.constant dense<0.000000e+00> : vector<1x8x8xf32>
    %55 = tpu.matmul %50, %52, %cst_22 {dimension_numbers = #tpu.dot_dimension_numbers<[2], [2], [1], [1], [0, 0, 0, 1, 1, 1], [0], [0]>} : vector<1x8x8xf32>, vector<1x8x8xf32>, vector<1x8x8xf32> -> vector<1x8x8xf32>
    "tpu.trace_stop"() : () -> ()
    %cst_23 = arith.constant dense<0xFF800000> : vector<1x8xf32>
    %56 = vector.multi_reduction <maximumf>, %55, %cst_23 [2] : vector<1x8x8xf32> to vector<1x8xf32>
    %57 = vector.shape_cast %56 : vector<1x8xf32> to vector<1x8x1xf32>
    %58 = vector.broadcast %57 : vector<1x8x1xf32> to vector<1x8x8xf32>
    %59 = arith.subf %55, %58 : vector<1x8x8xf32>
    %60 = math.exp %59 : vector<1x8x8xf32>
    %cst_24 = arith.constant dense<0.000000e+00> : vector<1x8xf32>
    %61 = vector.multi_reduction <add>, %60, %cst_24 [2] : vector<1x8x8xf32> to vector<1x8xf32>
    %62 = vector.shape_cast %61 : vector<1x8xf32> to vector<1x8x1xf32>
    %63 = vector.broadcast %62 : vector<1x8x1xf32> to vector<1x8x8xf32>
    %64 = arith.divf %60, %63 : vector<1x8x8xf32>
    "tpu.trace_start"() <{level = 10 : i32, message = "bqk,bkd->bqd"}> : () -> ()
    %cst_25 = arith.constant dense<0.000000e+00> : vector<1x8x8xf32>
    %65 = tpu.matmul %64, %54, %cst_25 {dimension_numbers = #tpu.dot_dimension_numbers<[2], [1], [1], [2], [0, 0, 0, 1, 1, 2], [0], [0]>} : vector<1x8x8xf32>, vector<1x8x8xf32>, vector<1x8x8xf32> -> vector<1x8x8xf32>
    "tpu.trace_stop"() : () -> ()
    %66 = vector.extract_strided_slice %9 {offsets = [0, 24], sizes = [8, 8], strides = [1, 1]} : vector<8x64xf32> to vector<8x8xf32>
    %67 = vector.shape_cast %66 : vector<8x8xf32> to vector<1x8x8xf32>
    %68 = vector.extract_strided_slice %9 {offsets = [0, 56], sizes = [8, 8], strides = [1, 1]} : vector<8x64xf32> to vector<8x8xf32>
    %69 = vector.shape_cast %68 : vector<8x8xf32> to vector<1x8x8xf32>
    %70 = vector.extract_strided_slice %14 {offsets = [0, 24], sizes = [8, 8], strides = [1, 1]} : vector<8x32xf32> to vector<8x8xf32>
    %71 = vector.shape_cast %70 : vector<8x8xf32> to vector<1x8x8xf32>
    "tpu.trace_start"() <{level = 10 : i32, message = "bqd,bkd->bqk"}> : () -> ()
    %cst_26 = arith.constant dense<0.000000e+00> : vector<1x8x8xf32>
    %72 = tpu.matmul %67, %69, %cst_26 {dimension_numbers = #tpu.dot_dimension_numbers<[2], [2], [1], [1], [0, 0, 0, 1, 1, 1], [0], [0]>} : vector<1x8x8xf32>, vector<1x8x8xf32>, vector<1x8x8xf32> -> vector<1x8x8xf32>
    "tpu.trace_stop"() : () -> ()
    %cst_27 = arith.constant dense<0xFF800000> : vector<1x8xf32>
    %73 = vector.multi_reduction <maximumf>, %72, %cst_27 [2] : vector<1x8x8xf32> to vector<1x8xf32>
    %74 = vector.shape_cast %73 : vector<1x8xf32> to vector<1x8x1xf32>
    %75 = vector.broadcast %74 : vector<1x8x1xf32> to vector<1x8x8xf32>
    %76 = arith.subf %72, %75 : vector<1x8x8xf32>
    %77 = math.exp %76 : vector<1x8x8xf32>
    %cst_28 = arith.constant dense<0.000000e+00> : vector<1x8xf32>
    %78 = vector.multi_reduction <add>, %77, %cst_28 [2] : vector<1x8x8xf32> to vector<1x8xf32>
    %79 = vector.shape_cast %78 : vector<1x8xf32> to vector<1x8x1xf32>
    %80 = vector.broadcast %79 : vector<1x8x1xf32> to vector<1x8x8xf32>
    %81 = arith.divf %77, %80 : vector<1x8x8xf32>
    "tpu.trace_start"() <{level = 10 : i32, message = "bqk,bkd->bqd"}> : () -> ()
    %cst_29 = arith.constant dense<0.000000e+00> : vector<1x8x8xf32>
    %82 = tpu.matmul %81, %71, %cst_29 {dimension_numbers = #tpu.dot_dimension_numbers<[2], [1], [1], [2], [0, 0, 0, 1, 1, 2], [0], [0]>} : vector<1x8x8xf32>, vector<1x8x8xf32>, vector<1x8x8xf32> -> vector<1x8x8xf32>
    "tpu.trace_stop"() : () -> ()
    %83 = tpu.concatenate %31, %48, %65, %82 in 2 : vector<1x8x8xf32>, vector<1x8x8xf32>, vector<1x8x8xf32>, vector<1x8x8xf32> -> vector<1x8x32xf32>
    %84 = vector.shape_cast %83 : vector<1x8x32xf32> to vector<8x32xf32>
    %c0_30 = arith.constant 0 : index
    %c0_31 = arith.constant 0 : index
    %85 = vector.load %arg7[%c0_30, %c0_31] : memref<32x32xf32, #tpu.memory_space<vmem>>, vector<32x32xf32>
    %cst_32 = arith.constant dense<0.000000e+00> : vector<8x32xf32>
    %86 = tpu.matmul %84, %85, %cst_32 {dimension_numbers = #tpu.dot_dimension_numbers<[1], [0], [0], [1], [0, 0, 1, 1], [], []>} : vector<8x32xf32>, vector<32x32xf32>, vector<8x32xf32> -> vector<8x32xf32>
    %c0_33 = arith.constant 0 : index
    %c0_34 = arith.constant 0 : index
    %87 = vector.load %arg8[%c0_33, %c0_34] : memref<1x32xf32, #tpu.memory_space<vmem>>, vector<1x32xf32>
    %88 = vector.broadcast %87 : vector<1x32xf32> to vector<8x32xf32>
    %89 = arith.addf %86, %88 : vector<8x32xf32>
    %90 = arith.addf %1, %89 : vector<8x32xf32>
    %cst_35 = arith.constant dense<0.000000e+00> : vector<8xf32>
    %91 = vector.multi_reduction <add>, %90, %cst_35 [1] : vector<8x32xf32> to vector<8xf32>
    %92 = vector.shape_cast %91 : vector<8xf32> to vector<8x1xf32>
    %cst_36 = arith.constant 3.200000e+01 : f32
    %93 = vector.broadcast %cst_36 : f32 to vector<8x1xf32>
    %94 = arith.divf %92, %93 : vector<8x1xf32>
    %95 = vector.broadcast %94 : vector<8x1xf32> to vector<8x32xf32>
    %96 = arith.subf %90, %95 : vector<8x32xf32>
    %97 = arith.mulf %96, %96 : vector<8x32xf32>
    %cst_37 = arith.constant dense<0.000000e+00> : vector<8xf32>
    %98 = vector.multi_reduction <add>, %97, %cst_37 [1] : vector<8x32xf32> to vector<8xf32>
    %99 = vector.shape_cast %98 : vector<8xf32> to vector<8x1xf32>
    %cst_38 = arith.constant 3.200000e+01 : f32
    %100 = vector.broadcast %cst_38 : f32 to vector<8x1xf32>
    %101 = arith.divf %99, %100 : vector<8x1xf32>
    %102 = vector.broadcast %94 : vector<8x1xf32> to vector<8x32xf32>
    %103 = arith.subf %90, %102 : vector<8x32xf32>
    %cst_39 = arith.constant 9.99999974E-6 : f32
    %104 = vector.broadcast %cst_39 : f32 to vector<8x1xf32>
    %105 = arith.addf %101, %104 : vector<8x1xf32>
    %106 = math.rsqrt %105 : vector<8x1xf32>
    %107 = vector.broadcast %106 : vector<8x1xf32> to vector<8x32xf32>
    %108 = arith.mulf %103, %107 : vector<8x32xf32>
    %c0_40 = arith.constant 0 : index
    %c0_41 = arith.constant 0 : index
    %109 = vector.load %arg9[%c0_40, %c0_41] : memref<1x32xf32, #tpu.memory_space<vmem>>, vector<1x32xf32>
    %110 = vector.broadcast %109 : vector<1x32xf32> to vector<8x32xf32>
    %111 = arith.mulf %108, %110 : vector<8x32xf32>
    %c0_42 = arith.constant 0 : index
    %c0_43 = arith.constant 0 : index
    %112 = vector.load %arg10[%c0_42, %c0_43] : memref<1x32xf32, #tpu.memory_space<vmem>>, vector<1x32xf32>
    %113 = vector.broadcast %112 : vector<1x32xf32> to vector<8x32xf32>
    %114 = arith.addf %111, %113 : vector<8x32xf32>
    %115 = vector.shape_cast %114 : vector<8x32xf32> to vector<1x8x32xf32>
    %c0_44 = arith.constant 0 : index
    %c0_45 = arith.constant 0 : index
    %c0_46 = arith.constant 0 : index
    %116 = vector.load %arg11[%c0_44, %c0_45, %c0_46] : memref<1x8x32xf32, #tpu.memory_space<vmem>>, vector<1x8x32xf32>
    tpu.vector_store %arg11[%c0_44, %c0_45, %c0_46], %115 {strides = array<i32>} : memref<1x8x32xf32, #tpu.memory_space<vmem>>, vector<1x8x32xf32>,
    return
  }
  func.func @transform_0(%arg0: i32) -> (i32, i32, i32) {
    %c0_i32 = arith.constant 0 : i32
    %c0_i32_0 = arith.constant 0 : i32
    %c0_i32_1 = arith.constant 0 : i32
    return %arg0, %c0_i32, %c0_i32_0 : i32, i32, i32
  }
  func.func @transform_1(%arg0: i32) -> (i32, i32, i32) {
    %c0_i32 = arith.constant 0 : i32
    %c0_i32_0 = arith.constant 0 : i32
    %c0_i32_1 = arith.constant 0 : i32
    return %arg0, %c0_i32, %c0_i32_0 : i32, i32, i32
  }
  func.func @transform_2(%arg0: i32) -> (i32, i32) {
    %c0_i32 = arith.constant 0 : i32
    %c0_i32_0 = arith.constant 0 : i32
    %c0_i32_1 = arith.constant 0 : i32
    return %c0_i32, %c0_i32_0 : i32, i32
  }
  func.func @transform_3(%arg0: i32) -> (i32, i32) {
    %c0_i32 = arith.constant 0 : i32
    %c0_i32_0 = arith.constant 0 : i32
    %c0_i32_1 = arith.constant 0 : i32
    return %c0_i32, %c0_i32_0 : i32, i32
  }
  func.func @transform_4(%arg0: i32) -> (i32, i32) {
    %c0_i32 = arith.constant 0 : i32
    %c0_i32_0 = arith.constant 0 : i32
    %c0_i32_1 = arith.constant 0 : i32
    return %c0_i32, %c0_i32_0 : i32, i32
  }
  func.func @transform_5(%arg0: i32) -> (i32, i32) {
    %c0_i32 = arith.constant 0 : i32
    %c0_i32_0 = arith.constant 0 : i32
    %c0_i32_1 = arith.constant 0 : i32
    return %c0_i32, %c0_i32_0 : i32, i32
  }
  func.func @transform_6(%arg0: i32) -> (i32, i32) {
    %c0_i32 = arith.constant 0 : i32
    %c0_i32_0 = arith.constant 0 : i32
    %c0_i32_1 = arith.constant 0 : i32
    return %c0_i32, %c0_i32_0 : i32, i32
  }
  func.func @transform_7(%arg0: i32) -> (i32, i32) {
    %c0_i32 = arith.constant 0 : i32
    %c0_i32_0 = arith.constant 0 : i32
    %c0_i32_1 = arith.constant 0 : i32
    return %c0_i32, %c0_i32_0 : i32, i32
  }
  func.func @transform_8(%arg0: i32) -> (i32, i32) {
    %c0_i32 = arith.constant 0 : i32
    %c0_i32_0 = arith.constant 0 : i32
    %c0_i32_1 = arith.constant 0 : i32
    return %c0_i32, %c0_i32_0 : i32, i32
  }
  func.func @transform_9(%arg0: i32) -> (i32, i32) {
    %c0_i32 = arith.constant 0 : i32
    %c0_i32_0 = arith.constant 0 : i32
    %c0_i32_1 = arith.constant 0 : i32
    return %c0_i32, %c0_i32_0 : i32, i32
  }
  func.func @transform_10(%arg0: i32) -> (i32, i32, i32) {
    %c0_i32 = arith.constant 0 : i32
    %c0_i32_0 = arith.constant 0 : i32
    %c0_i32_1 = arith.constant 0 : i32
    return %arg0, %c0_i32, %c0_i32_0 : i32, i32, i32
  }
}

</mosaic_0001>

<bundles_post_ra>
// kernel: tpu_custom_call.1
= control target key start
LH: loop header
LB: loop body
LE: loop exit
PB: predicated region body
PF: predicated region fallthrough
CT: control target
= control target key end

     0   :  { %s2421_s0 = inlined_call_operand.hbm [shape: f32[2,8,32], index: 0, kind: input, shape index: {}]   ;;  %s2422_s1 = inlined_call_operand.hbm [shape: f32[2,8,32], index: 1, kind: input, shape index: {}]   ;;  %s2423_s2 = inlined_call_operand.hbm [shape: f32[32,64], index: 2, kind: input, shape index: {}]   ;;  %s2424_s3 = inlined_call_operand.vmem [shape: f32[1,64], index: 3, kind: input, shape index: {}]   ;;  %s2425_s4 = inlined_call_operand.hbm [shape: f32[32,32], index: 4, kind: input, shape index: {}]   ;;  %s2426_s5 = inlined_call_operand.vmem [shape: f32[1,32], index: 5, kind: input, shape index: {}]   ;;  %s2427_s6 = inlined_call_operand.hbm [shape: f32[32,32], index: 6, kind: input, shape index: {}]   ;;  %s2428_s7 = inlined_call_operand.vmem [shape: f32[1,32], index: 7, kind: input, shape index: {}]   ;;  %s2429_s8 = inlined_call_operand.vmem [shape: f32[1,32], index: 8, kind: input, shape index: {}]   ;;  %s2430_s9 = inlined_call_operand.vmem [shape: f32[1,32], index: 9, kind: input, shape index: {}]   ;;  %s2431_s10 = inlined_call_operand.hbm [shape: f32[2,8,32], index: 10, kind: output, shape index: {}]  }
   0x1   :  { %2440 = sst [smem:[#allocation21_spill]] %s2423_s2 }
   0x2   :  { %2441 = sst [smem:[#allocation22_spill]] %s2425_s4 }
   0x3   :  { %2442 = sst [smem:[#allocation23_spill]] %s2427_s6 }
   0x4   :  { %15 = vsyncpa [#allocation3], 0 }
   0x5   :  { %17 = vsyncpa [#allocation3 + $0x1], 0 }
   0x6   :  { %18 = vsyncpa [#allocation6], 0 }
   0x7   :  { %20 = vsyncpa [#allocation6 + $0x1], 0 }
   0x8   :  { %21 = vsyncpa [#allocation9], 0 }
   0x9   :  { %22 = vsyncpa [#allocation4], 0 }
   0xa   :  { %24 = vsyncpa [#allocation4 + $0x1], 0  ;;  %s2099_s13 = smov 0   ;;  %s2101_s14 = smov 0  }
   0xb   :  { %s2103_s15 = smov 0   ;;  %s2105_s16 = smov 0  }
   0xc LB: > { %2443 = sst [smem:[#allocation17_spill]] %s2018_s15  ;;  %s2120_s17 = sadd.s32 4294967295, %s2022_s16   ;;  %s2022_s16 = sphi %s2105_s16, %s2467_s16   ;;  %s2018_s15 = sphi %s2103_s15, %s2469_s15   ;;  %s2014_s14 = sphi %s2101_s14, %s2471_s14   ;;  %s2010_s13 = sphi %s2099_s13, %s2470_s13  }
   0xd   : > { %s1553_s18 = sadd.s32 4294967294, %s2022_s16   ;;  %p50_p0 = scmp.ne.s32.totalorder %s2014_s14, %s2010_s13 }
   0xe   : > { %p2432_p1 = scmp.eq.s32.totalorder %s2120_s17, 0  ;;  %p274_p3 = scmp.eq.s32.totalorder %s1553_s18, 1 }
   0xf   : > { %p1554_p5 = scmp.ge.s32.totalorder %s2022_s16, 1  ;;  %p281_p7 = scmp.lt.s32.totalorder %s2022_s16, 3 }
  0x10   : > { %p2129_p4 = por %p2432_p1, %p50_p0  ;;  %p2134_p6 = por %p274_p3, %p50_p0 }
  0x11   : > { %p2139_p8 = pnand %p1554_p5, %p281_p7  ;;  %s2024_s22 = smov [#allocation7]  }
  0x12   : > { %s2444_s19 = scalar_select %p2129_p4, 1, 0 }
  0x13   : > { %s2445_s20 = scalar_select %p2134_p6, 1, 0 }
  0x14   : > { %s2447_s21 = scalar_select %p2139_p8, 1, 0 }
  0x15   : > { %2446 = sst [smem:[#allocation18_spill]] %s2445_s20  ;;  %s293_s23 = sshll.u32 %s2024_s22, 4  ;;  %s294_s23 = int_to_ptr.vmem [resolvable:$true] %s293_s23 }
  0x16   : > { %p1716_p9 = pneg %p2139_p8  ;;  %s2025_s25 = smov [#allocation8]  }
  0x17   : > { %s309_s26 = sshll.u32 %s2025_s25, 4  ;;  %s2026_s27 = smov [#allocation10]   ;;  %s310_s26 = int_to_ptr.vmem [resolvable:$true] %s309_s26 }
  0x18   : > { %p2148_p11 = pnand %p1716_p9, %p2432_p1  ;;  %s325_s28 = sshll.u32 %s2026_s27, 4  ;;  %s326_s28 = int_to_ptr.vmem [resolvable:$true] %s325_s28 }
  0x19   : > { %s1823_s29 = scalar_lea.vmem %s294_s23, 512  ;;  %p1831_p5 = scmp.lt.s32.totalorder %s294_s23, %s294_s23 }
  0x1a   : > { %p1814_p12 = pneg %p2148_p11  ;;  %p1824_p13 = scmp.ne.s32.totalorder %s294_s23, %s1823_s29 }
  0x1b   : > { %p1832_p7 = scmp.lt.s32.totalorder %s1823_s29, %s1823_s29 }
  0x1c   : > { %p1826_p0 = pnand %p1824_p13, %p1814_p12 }
  0x1d   : > { %p1833_p9 = por %p1832_p7, %p1831_p5 }
  0x1e   : > { %p1827_p3 = pneg %p1826_p0 }
  0x20   : > { %p1834_p10 = pnand %p1833_p9, %p1827_p3 }
  0x22   : > { %1837 = shalt.err (!%p1834_p10)
}
  0x23   : > { %s2027_s30 = smov 128   ;;  %s2028_s11 = smov 8  }
  0x24   : > { %s2449_s2 = sld [smem:[#allocation21_spill]]  ;;  %s1849_s22 = scalar_lea.vmem %s310_s26, 512 }
  0x25   : > { %p1850_p1 = scmp.ne.s32.totalorder %s310_s26, %s1849_s22  ;;  %p1857_p2 = scmp.lt.s32.totalorder %s310_s26, %s310_s26 }
  0x26   : > { %p1858_p6 = scmp.lt.s32.totalorder %s1849_s22, %s1849_s22 }
  0x27   : > { %p1852_p13 = pnand %p1850_p1, %p1814_p12 }
  0x28   : > { %p1859_p5 = por %p1858_p6, %p1857_p2 }
  0x29   : > { %p1853_p0 = pneg %p1852_p13 }
  0x2a   : > { %1719 = dma.hbm_to_vmem [thread:$0]  (!%p2148_p11), %s2449_s2, 512, %s294_s23, [#allocation6], %s2027_s30, %s2027_s30, %s2028_s11  }
  0x2b   : > { %p1860_p3 = pnand %p1859_p5, %p1853_p0 }
  0x2d   : > { %1863 = shalt.err (!%p1860_p3)
}
  0x2e   : > { %s2450_s4 = sld [smem:[#allocation22_spill]]  ;;  %s1875_s23 = scalar_lea.vmem %s326_s28, 512 }
  0x2f   : > { %p1876_p10 = scmp.ne.s32.totalorder %s326_s28, %s1875_s23  ;;  %p1883_p9 = scmp.lt.s32.totalorder %s326_s28, %s326_s28 }
  0x30   : > { %p1884_p13 = scmp.lt.s32.totalorder %s1875_s23, %s1875_s23 }
  0x31   : > { %p1878_p7 = pnand %p1876_p10, %p1814_p12 }
  0x32   : > { %p1885_p4 = por %p1884_p13, %p1883_p9 }
  0x33   : > { %p1879_p1 = pneg %p1878_p7 }
  0x34   : > { %1722 = dma.hbm_to_vmem [thread:$0]  (!%p2148_p11), %s2450_s4, 512, %s310_s26, [#allocation9], %s2027_s30, %s2027_s30, %s2028_s11  }
  0x35   : > { %p1886_p2 = pnand %p1885_p4, %p1879_p1 }
  0x37   : > { %1889 = shalt.err (!%p1886_p2)
}
  0x38   : > { %s2451_s6 = sld [smem:[#allocation23_spill]]  ;;  %s2179_s26 = sadd.s32 1, %s2022_s16  }
  0x39   : > { %2452 = sst [smem:[#allocation19_spill]] %s2179_s26  ;;  %s34_s18 = ssub.s32 %s2022_s16, %s2179_s26 }
  0x3a   : > { %s37_s24 = sadd.s32 1, %s2018_s15  ;;  %p35_p4 = scmp.eq.s32.totalorder %s34_s18, 0 }
  0x3b   : > { %p44_p6 = scmp.ne.s32.totalorder %s2018_s15, %s2014_s14  ;;  %p45_p12 = scmp.eq.s32.totalorder %s2022_s16, 0 }
  0x3c   : > { %p1740_p0 = scmp.lt.s32.totalorder %s2022_s16, 2  ;;  %p2454_p3 = scmp.eq.s32.totalorder %s2120_s17, 1 }
  0x3d   : > { %s2189_s22 = scalar_select %p35_p4, %s2018_s15, %s37_s24  }
  0x3e   : > { %1725 = dma.hbm_to_vmem [thread:$0]  (!%p2148_p11), %s2451_s6, 512, %s326_s28, [#allocation9], %s2027_s30, %s2027_s30, %s2028_s11  }
  0x3f   : > { %2453 = sst [smem:[#allocation20_spill]] %s2189_s22  ;;  %p46_p5 = por %p45_p12, %p44_p6 }
  0x40   : > { %p2193_p10 = por %p2454_p3, %p44_p6  ;;  %s348_s27 = sand.u32 1, %s2018_s15  }
  0x41   : > { %s1560_s23 = sshll.u32 %s2022_s16, 7  ;;  %s2199_s28 = sshll.u32 %s348_s27, 3 }
  0x42   : > { %s2455_s25 = scalar_select %p2193_p10, 1, 0 }
  0x43   : > { %s2204_s29 = scalar_lea.hbm %s2421_s0, %s1560_s23  ;;  %s352_s12 = scalar_lea.vmem [#allocation2], %s2199_s28 }
  0x44   : > { %s359_s18 = sshll.u32 %s352_s12, 4  ;;  %p2207_p11 = pnand %p1740_p0, %p46_p5  ;;  %s360_s18 = int_to_ptr.vmem [resolvable:$true] %s359_s18 }
  0x45   : > { %s2214_s6 = scalar_lea.hbm %s2422_s1, %s1560_s23  ;;  %s349_s30 = scalar_lea.sflag [#allocation3], %s348_s27 }
  0x46   : > { %s1890_s11 = scalar_lea.hbm %s2204_s29, 128  ;;  %p1892_p1 = pneg %p2207_p11 }
  0x47   : > { %p1891_p7 = scmp.ne.s32.totalorder %s2204_s29, %s1890_s11  ;;  %s1895_s15 = scalar_lea.hbm %s2421_s0, 256 }
  0x48   : > { %p1896_p2 = scmp.lt.s32.totalorder %s2204_s29, %s2421_s0  ;;  %p1897_p4 = scmp.lt.s32.totalorder %s1895_s15, %s1890_s11 }
  0x49   : > { %p1893_p9 = pnand %p1892_p1, %p1891_p7 }
  0x4a   : > { %p1898_p6 = por %p1897_p4, %p1896_p2 }
  0x4b   : > { %p1894_p13 = pneg %p1893_p9 }
  0x4d   : > { %p1899_p12 = pnand %p1898_p6, %p1894_p13 }
  0x4f   : > { %1902 = shalt.err (!%p1899_p12)
}
  0x50   : > { %s1903_s2 = scalar_lea.vmem %s360_s18, 128  ;;  %s2029_s4 = smov [#allocation2]  }
  0x51   : > { %p1904_p0 = scmp.ne.s32.totalorder %s360_s18, %s1903_s2  ;;  %s1908_s27 = sshll.u32 %s2029_s4, 4  ;;  %s1909_s27 = int_to_ptr.vmem [resolvable:$false] %s1908_s27 }
  0x52   : > { %s1910_s22 = scalar_lea.vmem %s1909_s27, 256  ;;  %p1911_p7 = scmp.lt.s32.totalorder %s360_s18, %s1909_s27 }
  0x53   : > { %p1906_p5 = pnand %p1904_p0, %p1892_p1  ;;  %p1912_p9 = scmp.lt.s32.totalorder %s1910_s22, %s1903_s2 }
  0x55   : > { %p1907_p3 = pneg %p1906_p5  ;;  %p1913_p10 = por %p1912_p9, %p1911_p7 }
  0x57   : > { %p1914_p8 = pnand %p1913_p10, %p1907_p3 }
  0x59   : > { %1917 = shalt.err (!%p1914_p8)
}
  0x5a   : > { %1729 = dma.hbm_to_vmem [thread:$0]  (!%p2207_p11), %s2204_s29, 128, %s360_s18, %s349_s30  }
  0x5b   : > { %s366_s15 = sand.u32 1, %s2022_s16   ;;  %s370_s20 = scalar_lea.vmem [#allocation5], %s2199_s28 }
  0x5c   : > { %s377_s26 = sshll.u32 %s370_s20, 4  ;;  %s367_s23 = scalar_lea.sflag [#allocation6], %s366_s15  ;;  %s378_s26 = int_to_ptr.vmem [resolvable:$true] %s377_s26 }
  0x5d   : > { %s1918_s11 = scalar_lea.hbm %s2214_s6, 128  ;;  %s1923_s4 = scalar_lea.hbm %s2422_s1, 256 }
  0x5e   : > { %p1919_p13 = scmp.ne.s32.totalorder %s2214_s6, %s1918_s11  ;;  %p1924_p2 = scmp.lt.s32.totalorder %s2214_s6, %s2422_s1 }
  0x5f   : > { %p1925_p4 = scmp.lt.s32.totalorder %s1923_s4, %s1918_s11 }
  0x60   : > { %p1921_p8 = pnand %p1919_p13, %p1892_p1 }
  0x61   : > { %p1926_p6 = por %p1925_p4, %p1924_p2 }
  0x62   : > { %p1922_p10 = pneg %p1921_p8 }
  0x64   : > { %p1927_p12 = pnand %p1926_p6, %p1922_p10 }
  0x66   : > { %1930 = shalt.err (!%p1927_p12)
}
  0x67   : > { %s1931_s28 = scalar_lea.vmem %s378_s26, 128  ;;  %s2030_s29 = smov [#allocation5]  }
  0x68   : > { %p1932_p0 = scmp.ne.s32.totalorder %s378_s26, %s1931_s28  ;;  %s1936_s18 = sshll.u32 %s2030_s29, 4  ;;  %s1937_s18 = int_to_ptr.vmem [resolvable:$false] %s1936_s18 }
  0x69   : > { %s1938_s30 = scalar_lea.vmem %s1937_s18, 256  ;;  %p1939_p7 = scmp.lt.s32.totalorder %s378_s26, %s1937_s18 }
  0x6a   : > { %p1934_p5 = pnand %p1932_p0, %p1892_p1  ;;  %p1940_p9 = scmp.lt.s32.totalorder %s1938_s30, %s1931_s28 }
  0x6c   : > { %p1935_p3 = pneg %p1934_p5  ;;  %p1941_p13 = por %p1940_p9, %p1939_p7 }
  0x6e   : > { %p1942_p8 = pnand %p1941_p13, %p1935_p3 }
  0x70   : > { %1945 = shalt.err (!%p1942_p8)
}
  0x71   : > { %1732 = dma.hbm_to_vmem [thread:$0]  (!%p2207_p11), %s2214_s6, 128, %s378_s26, %s367_s23  }
  0x72   : > { %p2457_p10 = scmp.ne.s32.totalorder %s2447_s21, 0 }
  0x73   : > { %s2259_s15 = sand.u32 (!%p2457_p10), 1, %s2014_s14   ;;  %p2458_p1 = scmp.ne.s32.totalorder (!%p2457_p10), %s2444_s19, 0 }
  0x74   : > { %386 = sbr.rel (%p2457_p10) target bundleno = 1844 (0x734), region = 60  ;;  %s2262_s20 = sshll.u32 (!%p2457_p10), %s2259_s15, 3 }
  0x75   : > { %s389_s11 = scalar_lea.sflag (!%p2457_p10), [#allocation3], %s2259_s15  ;;  %s392_s12 = scalar_lea.vmem (!%p2457_p10), [#allocation2], %s2262_s20 }
  0x79   : > { %1989 = dma.done.wait (%p2458_p1), %s389_s11, 128  }
  0x7a   : > { %1991 = vsyncadd (%p2458_p1), %s389_s11, 4294967168  ;;  %s397_s6 = sand.u32 1, %s2120_s17   ;;  %s401_s24 = scalar_lea.vmem [#allocation5], %s2262_s20 }
  0x7b   : > { %s398_s21 = scalar_lea.sflag [#allocation6], %s397_s6 }
  0x7c   : > { %1993 = dma.done.wait (%p2458_p1), %s398_s21, 128  }
  0x7d   : > { %1995 = vsyncadd (%p2458_p1), %s398_s21, 4294967168  ;;  %p2459_p11 = scmp.eq.s32.totalorder %s2120_s17, 0 }
  0x7f   : > { %1997 = dma.done.wait (%p2459_p11), [#allocation6], 512   ;;  %p2460_p2 = pmov %p2459_p11 }
  0x81   : > { %1999 = vsyncadd (%p2460_p2), [#allocation6], 4294966784  ;;  %p2461_p4 = pmov %p2460_p2 }
  0x82   : > { %p2462_p6 = pmov %p2460_p2 }
  0x83   : > { %2001 = dma.done.wait (%p2461_p4), [#allocation9], 1024  }
  0x84   : > { %2003 = vsyncadd (%p2462_p6), [#allocation9], 4294966272  ;;  %v2031_v0 = vmov 0.0   ;;  %vm2032_vm0 = vmmov 0   ;;  %v461_v1 = vld [vmem:[#allocation7 + $0x18] sm:$0xff]  ;;  %v460_v2 = vld [vmem:[#allocation7 + $0x10] sm:$0xff] }
  0x85   : > { %1625 = vmatprep.subr.mxu0 %v2031_v0  ;;  %1633 = vmatprep.mubr.msk.f32.mxu0 %vm2032_vm0, %v2031_v0  ;;  %v2290_v3 = vld [vmem:[%s392_s12] sm:$0xff]  ;;  %v456_v4 = vld [vmem:[%s401_s24] sm:$0xff]  ;;  %vm469_vm1 = vcmask 261120   ;;  %s2033_s23 = smov 120   ;;  %s2034_s2 = smov 96   ;;  %vm630_vm2 = vcmask 64512  }
  0x86   : > { %1636 = vmatprep.subr.mxu1 %v2031_v0  ;;  %1644 = vmatprep.mubr.msk.f32.mxu1 %vm2032_vm0, %v2031_v0  ;;  %v459_v5 = vld [vmem:[#allocation7 + $0x8] sm:$0xff]  ;;  %v458_v6 = vld [vmem:[#allocation7] sm:$0xff]  ;;  %v457_v7 = vadd.f32 %v456_v4, %v2290_v3  ;;  %v546_v8 = vld [vmem:[#allocation8 + $0x18] sm:$0xff]  ;;  %s2035_s4 = smov 80   ;;  %s2036_s27 = smov 88   ;;  %vm1298_vm3 = vcmask 130048  }
  0x87   : > { %1626 = vmatpush3.msra.mxu0 %v461_v1  ;;  %v545_v9 = vld [vmem:[#allocation8 + $0x10] sm:$0xff]  ;;  %1637 = vmatpush3.msra.mxu1 %v546_v8  ;;  %v544_v10 = vld [vmem:[#allocation8 + $0x8] sm:$0xff]  ;;  %v543_v11 = vld [vmem:[#allocation8] sm:$0xff]  ;;  %s2037_s22 = smov 72   ;;  %s2038_s28 = smov 112   ;;  %vm1300_vm4 = vcmask 195584  }
  0x88   : > { %1627 = vmatprep.subr.mxu0 %v2031_v0  ;;  %1638 = vmatprep.subr.mxu1 %v2031_v0  ;;  %v1570_v12 = vld [vmem:[%s2424_s3] ss:$0 sm:$0xff]  ;;  %s2039_s29 = smov 104   ;;  %s2040_s11 = smov 8  }
  0x89   : > { %1628 = vmatpush3.msra.mxu0 %v460_v2  ;;  %1639 = vmatpush3.msra.mxu1 %v545_v9  ;;  %v1572_v18 = vld [vmem:[%s2426_s5] ss:$0 sm:$0xff]  ;;  %s2041_s12 = smov 16   ;;  %s2042_s6 = smov 24  }
  0x8a   : > { %1629 = vmatprep.subr.mxu0 %v2031_v0  ;;  %1640 = vmatprep.subr.mxu1 %v2031_v0  ;;  %s1419_s30 = scalar_lea.sflag [#allocation4], %s2259_s15  ;;  %p2463_p0 = scmp.ne.s32.totalorder %s2455_s25, 0 }
  0x8b   : > { %1630 = vmatpush3.msra.mxu0 %v459_v5  ;;  %1641 = vmatpush3.msra.mxu1 %v544_v10 }
  0x8c   : > { %1631 = vmatprep.subr.mxu0 %v2031_v0  ;;  %1642 = vmatprep.subr.mxu1 %v2031_v0 }
  0x8d   : > { %1632 = vmatpush3.msra.mxu0 %v458_v6  ;;  %1643 = vmatpush3.msra.mxu1 %v543_v11 }
  0x8e   : > { %1634 = vmatmul.mubr.msk.f32.vlgmr.msra.gmra.mxu0 %vm469_vm1, %v457_v7  ;;  %1657 = vmatprep.subr.mxu0 %v2031_v0 }
  0x8f   : > { %1659 = vmatprep.mubr.msk.f32.mxu0 %vm2032_vm0, %v2031_v0  ;;  %1645 = vmatmul.mubr.msk.f32.vlgmr.msra.gmra.mxu1 %vm469_vm1, %v2290_v3 }
  0x90   : > { %1647 = vmatprep.subr.mxu1 %v2031_v0  ;;  %1649 = vmatprep.mubr.msk.f32.mxu1 %vm2032_vm0, %v2031_v0 }
 0x14e   : > { %v539_v13 = vpop.f32.mrf.mxu0 }
 0x14f   : > { %v540_v14 = vadd.f32 %v1570_v12, %v539_v13  ;;  %v623_v16 = vpop.f32.mrf.mxu1  ;;  %v1305_v12 = vld [vmem:[#allocation10 + $0x18] sm:$0xff]  ;;  %v1304_v13 = vld [vmem:[#allocation10 + $0x10] sm:$0xff] }
 0x150   : > { %v1635_v15 = vpop.f32.mrf.mxu0  ;;  %v2318_v21 = vadd.f32 %v1572_v18, %v623_v16 }
 0x151   : > { %789 = vrot.lane.b32.xlu1 %v540_v14, %s2033_s23  ;;  %628 = vrot.lane.b32.xlu0 %v540_v14, %s2034_s2  ;;  %v1646_v17 = vpop.f32.mrf.mxu1 }
 0x155   : > { %957 = vrot.lane.b32.xlu1 %v540_v14, %s2035_s4  ;;  %791 = vrot.lane.b32.xlu0 %v540_v14, %s2036_s27  ;;  %s1591_s4 = sshll.u32 %s2120_s17, 7  ;;  %s454_s27 = scalar_lea.vmem [#allocation11], %s2262_s20 }
 0x156   : > { %s1430_s18 = scalar_lea.hbm %s2431_s10, %s1591_s4 }
 0x159   : > { %1122 = vrot.lane.b32.xlu1 %v540_v14, %s2037_s22  ;;  %955 = vrot.lane.b32.xlu0 %v540_v14, %s2038_s28  ;;  %s1432_s22 = sshll.u32 %s454_s27, 4  ;;  %s1433_s22 = int_to_ptr.vmem [resolvable:$true] %s1432_s22 }
 0x15d   : > { %1120 = vrot.lane.b32.xlu0 %v540_v14, %s2039_s29 }
 0x1c3   : > { %v790_v19 = vpop.permute.xlu1 %789  ;;  %v629_v20 = vpop.permute.xlu0 %628 }
 0x1c4   : > { %1648 = vmatpush3.xpose.msk.msra.mxu1 %vm630_vm2, %v629_v20 }
 0x1c5   : > { %1652 = vmatprep.subr.mxu1 %v2031_v0 }
 0x1c7   : > { %1650 = vmatmul.mubr.msk.f32.vlgmr.msra.gmra.mxu1 %vm630_vm2, %v540_v14  ;;  %v792_v22 = vpop.permute.xlu0 %791  ;;  %v958_v23 = vpop.permute.xlu1 %957  ;;  %v1303_v14 = vld [vmem:[#allocation10 + $0x8] sm:$0xff] }
 0x1c8   : > { %1658 = vmatpush3.xpose.msk.msra.mxu0 %vm630_vm2, %v792_v22  ;;  %1653 = vmatpush3.msra.mxu1 %v2318_v21 }
 0x1c9   : > { %1667 = vmatprep.subr.mxu0 %v2031_v0  ;;  %1654 = vmatprep.mubr.msk.f32.mxu1 %vm2032_vm0, %v2031_v0 }
 0x1ca   : > { %1662 = vmatprep.subr.mxu1 %v2031_v0 }
 0x1cb   : > { %1660 = vmatmul.mubr.msk.f32.vlgmr.msra.gmra.mxu0 %vm630_vm2, %v790_v19  ;;  %v956_v24 = vpop.permute.xlu0 %955  ;;  %v1123_v25 = vpop.permute.xlu1 %1122 }
 0x1cc   : > { %1668 = vmatpush3.xpose.msk.msra.mxu0 %vm630_vm2, %v958_v23  ;;  %1669 = vmatprep.mubr.msk.f32.mxu0 %vm2032_vm0, %v2031_v0 }
 0x1cd   : > { %1677 = vmatprep.subr.mxu0 %v2031_v0 }
 0x1cf   : > { %1670 = vmatmul.mubr.msk.f32.vlgmr.msra.gmra.mxu0 %vm630_vm2, %v956_v24  ;;  %v1121_v26 = vpop.permute.xlu0 %1120 }
 0x1d0   : > { %1678 = vmatpush3.xpose.msk.msra.mxu0 %vm630_vm2, %v1123_v25  ;;  %1679 = vmatprep.mubr.msk.f32.mxu0 %vm2032_vm0, %v2031_v0 }
 0x1d1   : > { %1687 = vmatprep.subr.mxu0 %v2031_v0 }
 0x1d3   : > { %1680 = vmatmul.mubr.msk.f32.vlgmr.msra.gmra.mxu0 %vm630_vm2, %v1121_v26 }
 0x1d4   : > { %1695 = vmatprep.mubr.msk.f32.mxu0 %vm2032_vm0, %v2031_v0  ;;  %1688 = vmatpush3.msra.mxu0 %v1305_v12 }
 0x1d5   : > { %1689 = vmatprep.subr.mxu0 %v2031_v0 }
 0x1d6   : > { %1690 = vmatpush3.msra.mxu0 %v1304_v13 }
 0x1d7   : > { %1691 = vmatprep.subr.mxu0 %v2031_v0 }
 0x1d8   : > { %1692 = vmatpush3.msra.mxu0 %v1303_v14 }
 0x1d9   : > { %1693 = vmatprep.subr.mxu0 %v2031_v0 }
 0x287   : > { %v701_v27 = vpop.f32.mrf.mxu1 }
 0x288   : > { %v705_v28 = vsel %vm630_vm2, %v701_v27, -inf }
 0x289   : > { %706 = vmax.xlane.f32.xlu1 %v705_v28  ;;  %v1651_v29 = vpop.f32.mrf.mxu1 }
 0x28a   : > { %v1586_v29 = vld [vmem:[%s2428_s7] ss:$0 sm:$0xff] }
 0x28b   : > { %v863_v30 = vpop.f32.mrf.mxu0 }
 0x28c   : > { %v867_v31 = vsel %vm630_vm2, %v863_v30, -inf }
 0x28d   : > { %868 = vmax.xlane.f32.xlu0 %v867_v31  ;;  %v1661_v32 = vpop.f32.mrf.mxu0 }
 0x28f   : > { %v1029_v33 = vpop.f32.mrf.mxu0 }
 0x290   : > { %v1033_v34 = vsel %vm630_vm2, %v1029_v33, -inf }
 0x291   : > { %1034 = vmax.xlane.f32.xlu0 %v1033_v34  ;;  %v1671_v35 = vpop.f32.mrf.mxu0 }
 0x293   : > { %v1194_v36 = vpop.f32.mrf.mxu0 }
 0x294   : > { %v1198_v37 = vsel %vm630_vm2, %v1194_v36, -inf }
 0x295   : > { %1199 = vmax.xlane.f32.xlu1 %v1198_v37  ;;  %v1681_v38 = vpop.f32.mrf.mxu0 }
 0x312   : > { %v707_v39 = vpop.xlane.xlu1 %706 }
 0x313   : > { %v708_v40 = vsub.f32 %v701_v27, %v707_v39 }
 0x315   : > { %v709_v41 = vmul.f32 1.442695, %v708_v40 }
 0x316   : > { %v869_v42 = vpop.xlane.xlu0 %868 }
 0x317   : > { %1794 = vpow2.f32 %v709_v41  ;;  %v870_v43 = vsub.f32 %v863_v30, %v869_v42 }
 0x319   : > { %v871_v44 = vmul.f32 1.442695, %v870_v43 }
 0x31a   : > { %v1035_v45 = vpop.xlane.xlu0 %1034 }
 0x31b   : > { %1796 = vpow2.f32 %v871_v44  ;;  %v1036_v46 = vsub.f32 %v1029_v33, %v1035_v45  ;;  %v1589_v45 = vld [vmem:[%s2430_s9] ss:$0 sm:$0xff] }
 0x31d   : > { %v1037_v47 = vmul.f32 1.442695, %v1036_v46 }
 0x31e   : > { %v1200_v54 = vpop.xlane.xlu1 %1199 }
 0x31f   : > { %1798 = vpow2.f32 %v1037_v47  ;;  %v1201_v55 = vsub.f32 %v1194_v36, %v1200_v54 }
 0x321   : > { %v1202_v56 = vmul.f32 1.442695, %v1201_v55 }
 0x323   : > { %1800 = vpow2.f32 %v1202_v56 }
 0x324   : > { %v1795_v48 = vpop.eup %1794 }
 0x325   : > { %v711_v49 = vsel %vm630_vm2, %v1795_v48, 0.0 }
 0x326   : > { %712 = vadd.xlane.f32.xlu0 %v711_v49 }
 0x328   : > { %v1797_v50 = vpop.eup %1796 }
 0x329   : > { %v873_v51 = vsel %vm630_vm2, %v1797_v50, 0.0 }
 0x32a   : > { %874 = vadd.xlane.f32.xlu1 %v873_v51 }
 0x32c   : > { %v1799_v52 = vpop.eup %1798 }
 0x32d   : > { %v1039_v53 = vsel %vm630_vm2, %v1799_v52, 0.0 }
 0x32e   : > { %1040 = vadd.xlane.f32.xlu0 %v1039_v53 }
 0x330   : > { %v1801_v57 = vpop.eup %1800 }
 0x331   : > { %v1204_v58 = vsel %vm630_vm2, %v1801_v57, 0.0 }
 0x33b   : > { %1044 = vrot.lane.b32.xlu1 %v2318_v21, %s2038_s28 }
 0x344   : > { %879 = vrot.lane.b32.xlu0 %v2318_v21, %s2033_s23 }
 0x35f   : > { %1205 = vadd.xlane.f32.xlu1 %v1204_v58 }
 0x370   : > { %1209 = vrot.lane.b32.xlu1 %v2318_v21, %s2039_s29  ;;  %v1302_v21 = vld [vmem:[#allocation10] sm:$0xff] }
 0x371   : > { %1694 = vmatpush3.msra.mxu0 %v1302_v21 }
 0x3af   : > { %v713_v59 = vpop.xlane.xlu0 %712 }
 0x3b0   : > { %1802 = vrcp.f32 %v713_v59 }
 0x3b3   : > { %v875_v60 = vpop.xlane.xlu1 %874 }
 0x3b4   : > { %1804 = vrcp.f32 %v875_v60 }
 0x3b7   : > { %v1041_v61 = vpop.xlane.xlu0 %1040  ;;  %v1045_v5 = vpop.permute.xlu1 %1044 }
 0x3b8   : > { %1806 = vrcp.f32 %v1041_v61 }
 0x3bb   : > { %v880_v1 = vpop.permute.xlu0 %879 }
 0x3bd   : > { %v1803_v62 = vpop.eup %1802 }
 0x3be   : > { %v715_v63 = vmul.f32 %v1803_v62, %v1795_v48 }
 0x3c0   : > { %1655 = vmatmul.mubr.msk.f32.vlgmr.msra.gmra.mxu1 %vm630_vm2, %v715_v63 }
 0x3c1   : > { %v1805_v2 = vpop.eup %1804  ;;  %1663 = vmatpush3.msra.mxu1 %v880_v1  ;;  %1664 = vmatprep.mubr.msk.f32.mxu1 %vm2032_vm0, %v2031_v0 }
 0x3c2   : > { %1672 = vmatprep.subr.mxu1 %v2031_v0  ;;  %v877_v4 = vmul.f32 %v1805_v2, %v1797_v50 }
 0x3c4   : > { %1665 = vmatmul.mubr.msk.f32.vlgmr.msra.gmra.mxu1 %vm630_vm2, %v877_v4 }
 0x3c5   : > { %v1807_v6 = vpop.eup %1806  ;;  %1673 = vmatpush3.msra.mxu1 %v1045_v5  ;;  %1674 = vmatprep.mubr.msk.f32.mxu1 %vm2032_vm0, %v2031_v0 }
 0x3c6   : > { %v1043_v7 = vmul.f32 %v1807_v6, %v1799_v52  ;;  %1682 = vmatprep.subr.mxu1 %v2031_v0 }
 0x3c8   : > { %1675 = vmatmul.mubr.msk.f32.vlgmr.msra.gmra.mxu1 %vm630_vm2, %v1043_v7 }
 0x3c9   : > { %1684 = vmatprep.mubr.msk.f32.mxu1 %vm2032_vm0, %v2031_v0 }
 0x3e8   : > { %v1206_v8 = vpop.xlane.xlu1 %1205 }
 0x3e9   : > { %1808 = vrcp.f32 %v1206_v8 }
 0x3ec   : > { %v1210_v9 = vpop.permute.xlu1 %1209 }
 0x3ed   : > { %1683 = vmatpush3.msra.mxu1 %v1210_v9 }
 0x3f6   : > { %v1809_v10 = vpop.eup %1808 }
 0x3f7   : > { %v1208_v11 = vmul.f32 %v1809_v10, %v1801_v57 }
 0x3f9   : > { %1685 = vmatmul.mubr.msk.f32.vlgmr.msra.gmra.mxu1 %vm630_vm2, %v1208_v11 }
 0x480   : > { %v785_v15 = vpop.f32.mrf.mxu1 }
 0x482   : > { %v1656_v16 = vpop.f32.mrf.mxu1 }
 0x484   : > { %v951_v17 = vpop.f32.mrf.mxu1 }
 0x485   : > { %1286 = vrot.lane.b32.xlu0 %v951_v17, %s2040_s11  ;;  %s1946_s11 = scalar_lea.vmem %s1433_s22, 128 }
 0x486   : > { %v1666_v18 = vpop.f32.mrf.mxu1  ;;  %p1947_p12 = scmp.ne.s32.totalorder %s1433_s22, %s1946_s11 }
 0x488   : > { %v1116_v19 = vpop.f32.mrf.mxu1  ;;  %p1948_p5 = pnand %p1947_p12, %p2463_p0 }
 0x489   : > { %1290 = vrot.lane.b32.xlu1 %v1116_v19, %s2041_s12  ;;  %s2043_s12 = smov [#allocation11]  }
 0x48a   : > { %v1676_v20 = vpop.f32.mrf.mxu1  ;;  %p1949_p3 = pneg %p1948_p5 }
 0x4b9   : > { %v1281_v22 = vpop.f32.mrf.mxu1 }
 0x4ba   : > { %1294 = vrot.lane.b32.xlu0 %v1281_v22, %s2042_s6  ;;  %s1950_s6 = sshll.u32 %s2043_s12, 4  ;;  %s1951_s6 = int_to_ptr.vmem [resolvable:$false] %s1950_s6 }
 0x4bb   : > { %v1686_v23 = vpop.f32.mrf.mxu1  ;;  %s1952_s17 = scalar_lea.vmem %s1951_s6, 256  ;;  %p1953_p7 = scmp.lt.s32.totalorder %s1433_s22, %s1951_s6 }
 0x4bc   : > { %p1954_p9 = scmp.lt.s32.totalorder %s1952_s17, %s1946_s11 }
 0x4be   : > { %p1955_p13 = por %p1954_p9, %p1953_p7 }
 0x4c0   : > { %p1956_p8 = pnand %p1955_p13, %p1949_p3 }
 0x4f7   : > { %v1287_v24 = vpop.permute.xlu0 %1286 }
 0x4f8   : > { %v1297_v0 = vsel %vm630_vm2, %v785_v15, %v1287_v24 }
 0x4fb   : > { %v1291_v25 = vpop.permute.xlu1 %1290 }
 0x4fc   : > { %v1299_v26 = vsel %vm1298_vm3, %v1297_v0, %v1291_v25 }
 0x52c   : > { %v1295_v27 = vpop.permute.xlu0 %1294 }
 0x52d   : > { %v1301_v28 = vsel %vm1300_vm4, %v1299_v26, %v1295_v27 }
 0x52e   : > { %1696 = vmatmul.mubr.msk.f32.vlgmr.msra.gmra.mxu0 %vm469_vm1, %v1301_v28 }
 0x5ee   : > { %v1382_v30 = vpop.f32.mrf.mxu0 }
 0x5ef   : > { %v1383_v31 = vadd.f32 %v1586_v29, %v1382_v30 }
 0x5f0   : > { %v1697_v32 = vpop.f32.mrf.mxu0 }
 0x5f1   : > { %v1386_v33 = vadd.f32 %v1383_v31, %v2290_v3  ;;  %v1588_v3 = vld [vmem:[%s2429_s8] ss:$0 sm:$0xff] }
 0x5f3   : > { %v1387_v34 = vsel %vm469_vm1, %v1386_v33, 0.0 }
 0x5f4   : > { %1388 = vadd.xlane.f32.xlu1 %v1387_v34 }
 0x67d   : > { %v1389_v35 = vpop.xlane.xlu1 %1388 }
 0x67e   : > { %v1391_v36 = vmul.f32 0.03125, %v1389_v35 }
 0x680   : > { %v1392_v37 = vsub.f32 %v1386_v33, %v1391_v36 }
 0x682   : > { %v1393_v38 = vmul.f32 %v1392_v37, %v1392_v37 }
 0x684   : > { %v1394_v39 = vsel %vm469_vm1, %v1393_v38, 0.0 }
 0x685   : > { %1395 = vadd.xlane.f32.xlu0 %v1394_v39 }
 0x70e   : > { %v1396_v40 = vpop.xlane.xlu0 %1395 }
 0x70f   : > { %v1397_v41 = vmul.f32 0.03125, %v1396_v40 }
 0x711   : > { %v1398_v42 = vadd.f32 1e-05, %v1397_v41 }
 0x713   : > { %1810 = vrsqrt.f32 %v1398_v42 }
 0x720   : > { %v1811_v43 = vpop.eup %1810 }
 0x721   : > { %v1400_v44 = vmul.f32 %v1811_v43, %v1392_v37 }
 0x723   : > { %v1408_v46 = vmul.f32 %v1588_v3, %v1400_v44 }
 0x725   : > { %v1416_v47 = vadd.f32 %v1589_v45, %v1408_v46 }
 0x727   : > { %1417 = vst.msk [vmem:[%s454_s27] sm:$0xff] %vm469_vm1, %v1416_v47 }
 0x728   : > { %1959 = shalt.err (!%p1956_p8)
}
 0x729   : > { %s1960_s20 = scalar_lea.hbm %s1430_s18, 128  ;;  %s1964_s24 = scalar_lea.hbm %s2431_s10, 256 }
 0x72a   : > { %p1961_p10 = scmp.ne.s32.totalorder %s1430_s18, %s1960_s20  ;;  %p1965_p2 = scmp.lt.s32.totalorder %s1430_s18, %s2431_s10 }
 0x72b   : > { %p1966_p4 = scmp.lt.s32.totalorder %s1964_s24, %s1960_s20 }
 0x72c   : > { %p1962_p1 = pnand %p1961_p10, %p2463_p0 }
 0x72d   : > { %p1967_p6 = por %p1966_p4, %p1965_p2 }
 0x72e   : > { %p1963_p11 = pneg %p1962_p1 }
 0x730   : > { %p1968_p12 = pnand %p1967_p6, %p1963_p11 }
 0x732   : > { %1971 = shalt.err (!%p1968_p12)
}
 0x733   : > { %1714 = dma.vmem_to_hbm [thread:$0]  (%p2463_p0), %s1433_s22, 128, %s1430_s18, %s1419_s30  }
 0x734 PF: > { %s2464_s23 = sld [smem:[#allocation18_spill]]  ;;  %s1444_s2 = sand.u32 1, %s2010_s13  }
 0x735   : > { %p2466_p3 = scmp.ge.s32.totalorder %s2022_s16, 2  ;;  %s1445_s4 = scalar_lea.sflag [#allocation4], %s1444_s2 }
 0x73a   : > { %p2465_p5 = scmp.ne.s32.totalorder %s2464_s23, 0 }
 0x73c   : > { %p1734_p7 = pnand %p2466_p3, %p2465_p5 }
 0x73e   : > { %p1735_p9 = pneg %p1734_p7 }
 0x740   : > { %2005 = dma.done.wait (%p1735_p9), %s1445_s4, 128  }
 0x741   : > { %2007 = vsyncadd (%p1735_p9), %s1445_s4, 4294967168  ;;  %s2467_s16 = sld [smem:[#allocation19_spill]]  ;;  %s2470_s13 = smov %s2014_s14 }
 0x742   : > { %s2468_s27 = sld [smem:[#allocation17_spill]] }
 0x743   : > { %s2469_s15 = sld [smem:[#allocation20_spill]] }
 0x747   : > { %p27_p13 = scmp.ge.s32.totalorder %s2467_s16, 4  }
 0x748   : > { %s2471_s14 = smov %s2468_s27 }
 0x749   :  { %29 = sbr.rel (!%p27_p13) target bundleno = 12 (0xc), region = 130 }
 0x74e   :  { %1450 = vsyncpa [#allocation3], 1 }
 0x74f   :  { %1452 = vsyncpa [#allocation3 + $0x1], 1 }
 0x750   :  { %1453 = vsyncpa [#allocation6], 1 }
 0x751   :  { %1455 = vsyncpa [#allocation6 + $0x1], 1 }
 0x752   :  { %1456 = vsyncpa [#allocation9], 1 }
 0x753   :  { %1457 = vsyncpa [#allocation4], 1 }
 0x754   :  { %1459 = vsyncpa [#allocation4 + $0x1], 1 }

</bundles_post_ra>
